<compile_context>
chip_gen: v7x
topology: tpu7x:2x2x1
jax: 0.10.0
libtpu: 0.0.40
codegen_flags: <defaults>
</compile_context>

<pallas_src>
import jax
import jax.numpy as jnp
from jax.experimental import pallas as pl
from jax.experimental.pallas import tpu as pltpu


def _se_kernel(x_ref, w1t_ref, w2_ref, o_ref):
    """One batch element per grid step.

    x_ref   : (1, C, HW)  input tile — channels on sublanes, flat spatial on lanes
    w1t_ref : (C, Cr)     first Linear weight, transposed (torch W1 is (Cr, C))
    w2_ref  : (C, Cr)     second Linear weight (torch layout: (C, Cr))
    o_ref   : (1, C, HW)  output tile
    """
    x = x_ref[0]                                            # (C, HW)
    inv_hw = 1.0 / x.shape[1]                               # static constant

    # ---- squeeze: global average pool -> per-channel mean (C, 1) column ----
    m = jnp.sum(x, axis=1, keepdims=True) * inv_hw          # lane reduce (XLU)

    # ---- fc1 + ReLU:  h[r] = relu(sum_c W1[r, c] * m[c])  -> (1, Cr) row ----
    h = jnp.maximum(jnp.sum(w1t_ref[...] * m, axis=0, keepdims=True), 0.0)

    # ---- fc2 + sigmoid:  g[c] = sigmoid(sum_r W2[c, r] * h[r]) -> (C, 1) ----
    g = jax.nn.sigmoid(jnp.sum(w2_ref[...] * h, axis=1, keepdims=True))

    # ---- excite: scale every spatial location of channel c by g[c] ----
    o_ref[0] = (x * g).astype(o_ref.dtype)


def squeeze_excite_block(x_nchw, w1, w2):
    """SE block forward.

    x_nchw : (B, C, H, W) float32 (PyTorch layout)
    w1     : (Cr, C)  = nn.Linear(C, Cr, bias=False).weight
    w2     : (C, Cr)  = nn.Linear(Cr, C, bias=False).weight
    returns (B, C, H, W)
    """
    B, C, H, W = x_nchw.shape
    Cr = w1.shape[0]
    HW = H * W

    x2 = x_nchw.reshape(B, C, HW)     # free view of the contiguous NCHW tensor
    w1t = jnp.transpose(w1)           # (C, Cr)

    out2 = pl.pallas_call(
        _se_kernel,
        out_shape=jax.ShapeDtypeStruct((B, C, HW), x_nchw.dtype),
        grid_spec=pltpu.PrefetchScalarGridSpec(
            num_scalar_prefetch=0,
            grid=(B,),
            in_specs=[
                pl.BlockSpec((1, C, HW), lambda b: (b, 0, 0)),
                pl.BlockSpec((C, Cr), lambda b: (0, 0)),
                pl.BlockSpec((C, Cr), lambda b: (0, 0)),
            ],
            out_specs=pl.BlockSpec((1, C, HW), lambda b: (b, 0, 0)),
        ),
        compiler_params=pltpu.CompilerParams(
            dimension_semantics=("parallel",)),
    )(x2, w1t, w2)

    return out2.reshape(B, C, H, W)


# ------------------------------ pure-JAX reference ---------------------------

def reference(x, w1, w2):
    m = jnp.mean(x, axis=(2, 3))                  # (B, C)
    h = jax.nn.relu(m @ w1.T)                     # (B, Cr)
    g = jax.nn.sigmoid(h @ w2.T)                  # (B, C)
    return x * g[:, :, None, None]


# ----------------------------------- main -------------------------------------

if __name__ == "__main__":
    B, C, H, W = 2, 64, 16, 16
    reduction = 16                    # module default
    Cr = C // reduction               # = 4

    key = jax.random.PRNGKey(0)
    kx, k1, k2 = jax.random.split(key, 3)
    x = jax.random.normal(kx, (B, C, H, W), jnp.float32)
    w1 = 0.2 * jax.random.normal(k1, (Cr, C), jnp.float32)   # Linear(C, Cr).weight
    w2 = 0.2 * jax.random.normal(k2, (C, Cr), jnp.float32)   # Linear(Cr, C).weight

    out = jax.block_until_ready(squeeze_excite_block(x, w1, w2))
    ref = jax.block_until_ready(reference(x, w1, w2))

    err = float(jnp.max(jnp.abs(out - ref)))
    assert err < 1e-4, f"mismatch vs reference: max abs err = {err}"

    print("KERNEL_OK")
</pallas_src>

<mosaic_0001>
module attributes {stable_mosaic.version = 11 : i64} {
  func.func @_se_kernel(%arg0: i32, %arg1: memref<1x64x256xf32, #tpu.memory_space<vmem>>, %arg2: memref<64x4xf32, #tpu.memory_space<vmem>>, %arg3: memref<64x4xf32, #tpu.memory_space<vmem>>, %arg4: memref<1x64x256xf32, #tpu.memory_space<vmem>>) attributes {dimension_semantics = [#tpu.dimension_semantics<parallel>], iteration_bounds = array<i64: 2>, scalar_prefetch = 0 : i64, scratch_operands = 0 : i64, tpu.core_type = #tpu.core_type<tc>, window_params = [{transform_indices = @transform_0, window_bounds = array<i64: 1, 64, 256>}, {pipeline_mode = #tpu.pipeline_mode<synchronous>, transform_indices = @transform_1, window_bounds = array<i64: 64, 4>}, {pipeline_mode = #tpu.pipeline_mode<synchronous>, transform_indices = @transform_2, window_bounds = array<i64: 64, 4>}, {transform_indices = @transform_3, window_bounds = array<i64: 1, 64, 256>}]} {
    %c0 = arith.constant 0 : index
    %c0_0 = arith.constant 0 : index
    %c0_1 = arith.constant 0 : index
    %0 = vector.load %arg1[%c0, %c0_0, %c0_1] : memref<1x64x256xf32, #tpu.memory_space<vmem>>, vector<1x64x256xf32>
    %1 = vector.shape_cast %0 : vector<1x64x256xf32> to vector<64x256xf32>
    %cst = arith.constant dense<0.000000e+00> : vector<64xf32>
    %2 = vector.multi_reduction <add>, %1, %cst [1] : vector<64x256xf32> to vector<64xf32>
    %3 = vector.shape_cast %2 : vector<64xf32> to vector<64x1xf32>
    %cst_2 = arith.constant 3.906250e-03 : f32
    %4 = vector.broadcast %cst_2 : f32 to vector<64x1xf32>
    %5 = arith.mulf %3, %4 : vector<64x1xf32>
    %c0_3 = arith.constant 0 : index
    %c0_4 = arith.constant 0 : index
    %6 = vector.load %arg2[%c0_3, %c0_4] : memref<64x4xf32, #tpu.memory_space<vmem>>, vector<64x4xf32>
    %7 = vector.broadcast %5 : vector<64x1xf32> to vector<64x4xf32>
    %8 = arith.mulf %6, %7 : vector<64x4xf32>
    %cst_5 = arith.constant dense<0.000000e+00> : vector<4xf32>
    %9 = vector.multi_reduction <add>, %8, %cst_5 [0] : vector<64x4xf32> to vector<4xf32>
    %10 = vector.shape_cast %9 : vector<4xf32> to vector<1x4xf32>
    %cst_6 = arith.constant 0.000000e+00 : f32
    %11 = vector.broadcast %cst_6 : f32 to vector<1x4xf32>
    %12 = arith.maximumf %10, %11 : vector<1x4xf32>
    %c0_7 = arith.constant 0 : index
    %c0_8 = arith.constant 0 : index
    %13 = vector.load %arg3[%c0_7, %c0_8] : memref<64x4xf32, #tpu.memory_space<vmem>>, vector<64x4xf32>
    %14 = vector.broadcast %12 : vector<1x4xf32> to vector<64x4xf32>
    %15 = arith.mulf %13, %14 : vector<64x4xf32>
    %cst_9 = arith.constant dense<0.000000e+00> : vector<64xf32>
    %16 = vector.multi_reduction <add>, %15, %cst_9 [1] : vector<64x4xf32> to vector<64xf32>
    %17 = vector.shape_cast %16 : vector<64xf32> to vector<64x1xf32>
    %18 = arith.negf %17 : vector<64x1xf32>
    %19 = math.exp %18 : vector<64x1xf32>
    %cst_10 = arith.constant 1.000000e+00 : f32
    %20 = vector.broadcast %cst_10 : f32 to vector<64x1xf32>
    %21 = arith.addf %20, %19 : vector<64x1xf32>
    %22 = arith.divf %20, %21 : vector<64x1xf32>
    %23 = vector.broadcast %22 : vector<64x1xf32> to vector<64x256xf32>
    %24 = arith.mulf %1, %23 : vector<64x256xf32>
    %c0_11 = arith.constant 0 : index
    %c0_12 = arith.constant 0 : index
    %c0_13 = arith.constant 0 : index
    %25 = vector.load %arg4[%c0_11, %c0_12, %c0_13] : memref<1x64x256xf32, #tpu.memory_space<vmem>>, vector<1x64x256xf32>
    %26 = vector.shape_cast %25 : vector<1x64x256xf32> to vector<64x256xf32>
    %27 = vector.shape_cast %24 : vector<64x256xf32> to vector<1x64x256xf32>
    tpu.vector_store %arg4[%c0_11, %c0_12, %c0_13], %27 {strides = array<i32>} : memref<1x64x256xf32, #tpu.memory_space<vmem>>, vector<1x64x256xf32>,
    return
  }
  func.func @transform_0(%arg0: i32) -> (i32, i32, i32) {
    %c0_i32 = arith.constant 0 : i32
    %c0_i32_0 = arith.constant 0 : i32
    %c0_i32_1 = arith.constant 0 : i32
    return %arg0, %c0_i32, %c0_i32_0 : i32, i32, i32
  }
  func.func @transform_1(%arg0: i32) -> (i32, i32) {
    %c0_i32 = arith.constant 0 : i32
    %c0_i32_0 = arith.constant 0 : i32
    %c0_i32_1 = arith.constant 0 : i32
    return %c0_i32, %c0_i32_0 : i32, i32
  }
  func.func @transform_2(%arg0: i32) -> (i32, i32) {
    %c0_i32 = arith.constant 0 : i32
    %c0_i32_0 = arith.constant 0 : i32
    %c0_i32_1 = arith.constant 0 : i32
    return %c0_i32, %c0_i32_0 : i32, i32
  }
  func.func @transform_3(%arg0: i32) -> (i32, i32, i32) {
    %c0_i32 = arith.constant 0 : i32
    %c0_i32_0 = arith.constant 0 : i32
    %c0_i32_1 = arith.constant 0 : i32
    return %arg0, %c0_i32, %c0_i32_0 : i32, i32, i32
  }
}

</mosaic_0001>

<bundles_post_ra>
// kernel: tpu_custom_call.1
= control target key start
LH: loop header
LB: loop body
LE: loop exit
PB: predicated region body
PF: predicated region fallthrough
CT: control target
= control target key end

     0   :  { %8 = vsyncpa [#allocation3], 0  ;;  %s1026_s0 = inlined_call_operand.hbm [shape: f32[2,64,256], index: 0, kind: input, shape index: {}]   ;;  %s1027_s1 = inlined_call_operand.vmem [shape: f32[64,4], index: 1, kind: input, shape index: {}]   ;;  %s1028_s2 = inlined_call_operand.vmem [shape: f32[64,4], index: 2, kind: input, shape index: {}]   ;;  %s1029_s3 = inlined_call_operand.hbm [shape: f32[2,64,256], index: 3, kind: output, shape index: {}]  }
   0x1   :  { %10 = vsyncpa [#allocation3 + $0x1], 0 }
   0x2   :  { %11 = vsyncpa [#allocation4], 0 }
   0x3   :  { %13 = vsyncpa [#allocation4 + $0x1], 0  ;;  %s713_s12 = smov 0   ;;  %s715_s13 = smov 0  }
   0x4   :  { %s717_s14 = smov 0   ;;  %s719_s15 = smov 0  }
   0x5 LB: > { %s734_s16 = sadd.s32 4294967295, %s685_s15   ;;  %s483_s17 = sadd.s32 4294967294, %s685_s15   ;;  %s685_s15 = sphi %s719_s15, %s1042_s15   ;;  %s681_s14 = sphi %s717_s14, %s1041_s14   ;;  %s677_s13 = sphi %s715_s13, %s1040_s13   ;;  %s673_s12 = sphi %s713_s12, %s1039_s12  }
   0x6   : > { %s738_s18 = sadd.s32 1, %s685_s15   ;;  %s26_s19 = sadd.s32 1, %s681_s14 }
   0x7   : > { %s23_s20 = ssub.s32 %s685_s15, %s738_s18  ;;  %p33_p0 = scmp.ne.s32.totalorder %s681_s14, %s677_s13 }
   0x8   : > { %p24_p1 = scmp.eq.s32.totalorder %s23_s20, 0  ;;  %p34_p2 = scmp.eq.s32.totalorder %s685_s15, 0 }
   0x9   : > { %p39_p3 = scmp.ne.s32.totalorder %s677_s13, %s673_s12  ;;  %p40_p4 = scmp.eq.s32.totalorder %s734_s16, 0 }
   0xa   : > { %s750_s21 = scalar_select %p24_p1, %s681_s14, %s26_s19  }
   0xb   : > { %p752_p5 = por %p34_p2, %p33_p0  ;;  %p756_p6 = por %p40_p4, %p39_p3 }
   0xc   : > { %p105_p7 = scmp.eq.s32.totalorder %s734_s16, 1  ;;  %p111_p8 = scmp.eq.s32.totalorder %s483_s17, 1 }
   0xd   : > { %p519_p10 = scmp.lt.s32.totalorder %s685_s15, 2  ;;  %s137_s26 = sand.u32 1, %s681_s14  }
   0xe   : > { %p763_p11 = por %p105_p7, %p33_p0  ;;  %p767_p12 = por %p111_p8, %p39_p3 }
   0xf   : > { %s505_s27 = sshll.u32 %s685_s15, 11  ;;  %s486_s28 = sshll.u32 %s137_s26, 7 }
  0x10   : > { %s1033_s24 = scalar_select %p763_p11, 1, 0 }
  0x11   : > { %s1034_s25 = scalar_select %p767_p12, 1, 0 }
  0x12   : > { %s776_s4 = scalar_lea.hbm %s1026_s0, %s505_s27  ;;  %s141_s5 = scalar_lea.vmem [#allocation2], %s486_s28 }
  0x13   : > { %s148_s6 = sshll.u32 %s141_s5, 4  ;;  %p780_p13 = pnand %p519_p10, %p752_p5  ;;  %s784_s6 = int_to_ptr.vmem [resolvable:$true] %s148_s6 }
  0x14   : > { %s786_s8 = scalar_lea.sflag [#allocation3], %s137_s26  ;;  %s589_s9 = scalar_lea.hbm %s776_s4, 2048 }
  0x15   : > { %p590_p0 = scmp.ne.s32.totalorder %s776_s4, %s589_s9  ;;  %p591_p1 = pneg %p780_p13 }
  0x16   : > { %s594_s17 = scalar_lea.hbm %s1026_s0, 4096  ;;  %p595_p4 = scmp.lt.u32.totalorder %s776_s4, %s1026_s0 }
  0x17   : > { %p592_p2 = pnand %p591_p1, %p590_p0  ;;  %p596_p5 = scmp.lt.u32.totalorder %s594_s17, %s589_s9 }
  0x18   : > { %p598_p8 = scmp.lt.u32.totalorder %s589_s9, %s776_s4 }
  0x19   : > { %p593_p3 = pneg %p592_p2  ;;  %p597_p7 = por %p596_p5, %p595_p4 }
  0x1b   : > { %p599_p10 = por %p598_p8, %p597_p7 }
  0x1d   : > { %p600_p9 = pnand %p599_p10, %p593_p3 }
  0x1f   : > { %603 = shalt.err (!%p600_p9)
}
  0x20   : > { %s604_s22 = scalar_lea.vmem %s784_s6, 2048  ;;  %s687_s26 = smov [#allocation2]  }
  0x21   : > { %p605_p0 = scmp.ne.s32.totalorder %s784_s6, %s604_s22  ;;  %s609_s27 = sshll.u32 %s687_s26, 4  ;;  %s610_s27 = int_to_ptr.vmem [resolvable:$false] %s609_s27 }
  0x22   : > { %s611_s28 = scalar_lea.vmem %s610_s27, 4096  ;;  %p612_p11 = scmp.lt.s32.totalorder %s784_s6, %s610_s27 }
  0x23   : > { %p607_p2 = pnand %p605_p0, %p591_p1  ;;  %p613_p4 = scmp.lt.s32.totalorder %s611_s28, %s604_s22 }
  0x25   : > { %p608_p12 = pneg %p607_p2  ;;  %p614_p5 = por %p613_p4, %p612_p11 }
  0x27   : > { %p615_p7 = pnand %p614_p5, %p608_p12 }
  0x29   : > { %618 = shalt.err (!%p615_p7)
}
  0x2a   : > { %s688_s29 = smov 256   ;;  %s689_s30 = smov 16  }
  0x2b   : > { %514 = dma.hbm_to_vmem [thread:$0]  (!%p780_p13), %s776_s4, 2048, %s784_s6, %s786_s8, %s688_s29, %s688_s29, %s689_s30  }
  0x2c   : > { %p489_p9 = scmp.ge.s32.totalorder %s685_s15, 1  ;;  %p156_p1 = scmp.lt.s32.totalorder %s685_s15, 3 }
  0x2e   : > { %p157_p3 = pnand %p489_p9, %p156_p1 }
  0x2f   : > { %s817_s5 = sand.u32 (!%p157_p3), 1, %s677_s13  }
  0x30   : > { %160 = sbr.rel (%p157_p3) target bundleno = 441 (0x1b9), region = 32  ;;  %s490_s9 = sshll.u32 (!%p157_p3), %s817_s5, 7 }
  0x31   : > { %s163_s10 = scalar_lea.sflag (!%p157_p3), [#allocation3], %s817_s5  ;;  %s166_s11 = scalar_lea.vmem (!%p157_p3), [#allocation2], %s490_s9 }
  0x37   : > { %664 = dma.done.wait (%p756_p6), %s163_s10, 2048  }
  0x38   : > { %666 = vsyncadd (%p756_p6), %s163_s10, 4294965248  ;;  %v827_v0 = vld [vmem:[%s166_s11] sm:$0xff]  ;;  %v829_v1 = vld [vmem:[%s166_s11 + $0x8] sm:$0xff]  ;;  %vm253_vm0 = vcmask 31744   ;;  %s945_s23 = scalar_lea.vmem [#allocation5], %s490_s9  ;;  %s506_s9 = sshll.u32 %s734_s16, 11 }
  0x39   : > { %v831_v2 = vld [vmem:[%s166_s11 + $0x20] sm:$0xff]  ;;  %v205_v3 = vadd.f32 %v829_v1, %v827_v0  ;;  %v835_v4 = vld [vmem:[%s166_s11 + $0x28] sm:$0xff]  ;;  %v837_v5 = vld [vmem:[%s166_s11 + $0x10] sm:$0xff]  ;;  %s410_s4 = sshll.u32 %s945_s23, 4  ;;  %s976_s8 = scalar_lea.hbm %s1029_s3, %s506_s9  ;;  %s978_s4 = int_to_ptr.vmem [resolvable:$true] %s410_s4 }
  0x3a   : > { %v839_v6 = vld [vmem:[%s166_s11 + $0x18] sm:$0xff]  ;;  %v211_v7 = vadd.f32 %v835_v4, %v831_v2  ;;  %v843_v8 = vld [vmem:[%s166_s11 + $0x30] sm:$0xff]  ;;  %v851_v12 = vld [vmem:[%s166_s11 + $0x40] sm:$0xff]  ;;  %s397_s16 = scalar_lea.sflag [#allocation4], %s817_s5  ;;  %s619_s17 = scalar_lea.vmem %s978_s4, 2048 }
  0x3b   : > { %v845_v9 = vld [vmem:[%s166_s11 + $0x38] sm:$0xff]  ;;  %206 = vadd.xlane.f32.xlu0 %v205_v3  ;;  %v208_v10 = vadd.f32 %v839_v6, %v837_v5  ;;  %v853_v13 = vld [vmem:[%s166_s11 + $0x48] sm:$0xff]  ;;  %v855_v14 = vld [vmem:[%s166_s11 + $0x50] sm:$0xff]  ;;  %p620_p6 = scmp.ne.s32.totalorder %s978_s4, %s619_s17  ;;  %p1036_p11 = scmp.ne.s32.totalorder %s1033_s24, 0 }
  0x3c   : > { %212 = vadd.xlane.f32.xlu1 %v211_v7  ;;  %v214_v11 = vadd.f32 %v845_v9, %v843_v8  ;;  %v857_v15 = vld [vmem:[%s166_s11 + $0x58] sm:$0xff]  ;;  %v217_v16 = vadd.f32 %v853_v13, %v851_v12  ;;  %v863_v18 = vld [vmem:[%s166_s11 + $0x60] sm:$0xff]  ;;  %v865_v19 = vld [vmem:[%s166_s11 + $0x68] sm:$0xff]  ;;  %s690_s19 = smov [#allocation5]  }
  0x3d   : > { %v220_v17 = vadd.f32 %v857_v15, %v855_v14  ;;  %v867_v20 = vld [vmem:[%s166_s11 + $0x70] sm:$0xff]  ;;  %v869_v21 = vld [vmem:[%s166_s11 + $0x78] sm:$0xff]  ;;  %v223_v22 = vadd.f32 %v865_v19, %v863_v18  ;;  %v237_v27 = vld [vmem:[%s1027_s1] sm:$0xff]  ;;  %p621_p12 = pnand %p620_p6, %p1036_p11  ;;  %s623_s20 = sshll.u32 %s690_s19, 4  ;;  %s624_s20 = int_to_ptr.vmem [resolvable:$false] %s623_s20 }
  0x3e   : > { %v226_v23 = vadd.f32 %v869_v21, %v867_v20  ;;  %v239_v29 = vld [vmem:[%s1027_s1 + $0x10] sm:$0xff]  ;;  %v238_v30 = vld [vmem:[%s1027_s1 + $0x8] sm:$0xff]  ;;  %v240_v34 = vld [vmem:[%s1027_s1 + $0x18] sm:$0xff]  ;;  %s625_s22 = scalar_lea.vmem %s624_s20, 4096  ;;  %p626_p8 = scmp.lt.s32.totalorder %s978_s4, %s624_s20 }
  0x3f   : > { %209 = vadd.xlane.f32.xlu0 %v208_v10  ;;  %v241_v40 = vld [vmem:[%s1027_s1 + $0x20] sm:$0xff]  ;;  %v242_v45 = vld [vmem:[%s1027_s1 + $0x28] sm:$0xff]  ;;  %v243_v54 = vld [vmem:[%s1027_s1 + $0x30] sm:$0xff]  ;;  %p622_p13 = pneg %p621_p12  ;;  %p627_p10 = scmp.lt.s32.totalorder %s625_s22, %s619_s17 }
  0x40   : > { %215 = vadd.xlane.f32.xlu1 %v214_v11  ;;  %v244_v58 = vld [vmem:[%s1027_s1 + $0x38] sm:$0xff] }
  0x41   : > { %p628_p0 = por %p627_p10, %p626_p8 }
  0x43   : > { %218 = vadd.xlane.f32.xlu0 %v217_v16  ;;  %p629_p2 = pnand %p628_p0, %p622_p13 }
  0x44   : > { %221 = vadd.xlane.f32.xlu1 %v220_v17 }
  0x47   : > { %224 = vadd.xlane.f32.xlu0 %v223_v22 }
  0x48   : > { %227 = vadd.xlane.f32.xlu1 %v226_v23 }
  0xc8   : > { %v207_v24 = vpop.xlane.xlu0 %206 }
  0xc9   : > { %v229_v25 = vmul.f32 0.00390625, %v207_v24  ;;  %v213_v26 = vpop.xlane.xlu1 %212 }
  0xca   : > { %v231_v28 = vmul.f32 0.00390625, %v213_v26 }
  0xcb   : > { %v245_v32 = vmul.f32 %v237_v27, %v229_v25 }
  0xcc   : > { %v210_v31 = vpop.xlane.xlu0 %209  ;;  %v247_v37 = vmul.f32 %v239_v29, %v231_v28  ;;  %v277_v29 = vld [vmem:[%s1028_s2 + $0x8] sm:$0xff] }
  0xcd   : > { %v230_v33 = vmul.f32 0.00390625, %v210_v31  ;;  %v216_v35 = vpop.xlane.xlu1 %215  ;;  %v254_v42 = vsel %vm253_vm0, %v245_v32, 0.0  ;;  %v279_v32 = vld [vmem:[%s1028_s2 + $0x18] sm:$0xff] }
  0xce   : > { %v232_v36 = vmul.f32 0.00390625, %v216_v35  ;;  %v257_v49 = vsel %vm253_vm0, %v247_v37, 0.0 }
  0xcf   : > { %v246_v38 = vmul.f32 %v238_v30, %v230_v33  ;;  %v276_v30 = vld [vmem:[%s1028_s2] sm:$0xff]  ;;  %v278_v33 = vld [vmem:[%s1028_s2 + $0x10] sm:$0xff] }
  0xd0   : > { %v248_v39 = vmul.f32 %v240_v34, %v232_v36  ;;  %v219_v41 = vpop.xlane.xlu0 %218 }
  0xd1   : > { %v255_v43 = vsel %vm253_vm0, %v246_v38, 0.0  ;;  %v233_v44 = vmul.f32 0.00390625, %v219_v41  ;;  %v222_v46 = vpop.xlane.xlu1 %221  ;;  %v280_v41 = vld [vmem:[%s1028_s2 + $0x20] sm:$0xff] }
  0xd2   : > { %v256_v47 = vadd.f32 %v255_v43, %v254_v42  ;;  %v234_v48 = vmul.f32 0.00390625, %v222_v46  ;;  %v259_v50 = vsel %vm253_vm0, %v248_v39, 0.0  ;;  %v283_v46 = vld [vmem:[%s1028_s2 + $0x38] sm:$0xff] }
  0xd3   : > { %v249_v51 = vmul.f32 %v241_v40, %v233_v44  ;;  %v281_v40 = vld [vmem:[%s1028_s2 + $0x28] sm:$0xff] }
  0xd4   : > { %v258_v52 = vadd.f32 %v257_v49, %v256_v47  ;;  %v250_v53 = vmul.f32 %v242_v45, %v234_v48  ;;  %v225_v55 = vpop.xlane.xlu0 %224  ;;  %v282_v47 = vld [vmem:[%s1028_s2 + $0x30] sm:$0xff] }
  0xd5   : > { %v261_v56 = vsel %vm253_vm0, %v249_v51, 0.0  ;;  %v235_v57 = vmul.f32 0.00390625, %v225_v55  ;;  %v228_v59 = vpop.xlane.xlu1 %227 }
  0xd6   : > { %v260_v60 = vadd.f32 %v259_v50, %v258_v52  ;;  %v236_v61 = vmul.f32 0.00390625, %v228_v59  ;;  %v263_v62 = vsel %vm253_vm0, %v250_v53, 0.0 }
  0xd7   : > { %v251_v63 = vmul.f32 %v243_v54, %v235_v57 }
  0xd8   : > { %v262_v3 = vadd.f32 %v261_v56, %v260_v60  ;;  %v252_v7 = vmul.f32 %v244_v58, %v236_v61 }
  0xd9   : > { %v265_v10 = vsel %vm253_vm0, %v251_v63, 0.0 }
  0xda   : > { %v264_v11 = vadd.f32 %v263_v62, %v262_v3  ;;  %v267_v16 = vsel %vm253_vm0, %v252_v7, 0.0 }
  0xdc   : > { %v266_v17 = vadd.f32 %v265_v10, %v264_v11 }
  0xde   : > { %v268_v22 = vadd.f32 %v267_v16, %v266_v17 }
  0xe0   : > { %v269_v23 = vrot.slane %v268_v22, 4 }
  0xe2   : > { %v270_v24 = vadd.f32 %v269_v23, %v268_v22 }
  0xe4   : > { %v271_v25 = vrot.slane %v270_v24, 2 }
  0xe6   : > { %v272_v26 = vadd.f32 %v271_v25, %v270_v24 }
  0xe8   : > { %v273_v27 = vrot.slane %v272_v26, 1 }
  0xea   : > { %v274_v28 = vadd.f32 %v273_v27, %v272_v26 }
  0xec   : > { %v275_v31 = vmax.f32 %v274_v28, 0.0 }
  0xee   : > { %v285_v34 = vmul.f32 %v277_v29, %v275_v31  ;;  %v284_v35 = vmul.f32 %v276_v30, %v275_v31  ;;  %v287_v38 = vmul.f32 %v279_v32, %v275_v31  ;;  %v286_v39 = vmul.f32 %v278_v33, %v275_v31 }
  0xef   : > { %v289_v44 = vmul.f32 %v281_v40, %v275_v31  ;;  %v288_v45 = vmul.f32 %v280_v41, %v275_v31  ;;  %v291_v50 = vmul.f32 %v283_v46, %v275_v31  ;;  %v290_v51 = vmul.f32 %v282_v47, %v275_v31 }
  0xf0   : > { %v295_v36 = vsel %vm253_vm0, %v285_v34, 0.0  ;;  %v292_v37 = vsel %vm253_vm0, %v284_v35, 0.0  ;;  %v301_v42 = vsel %vm253_vm0, %v287_v38, 0.0  ;;  %v298_v43 = vsel %vm253_vm0, %v286_v39, 0.0 }
  0xf1   : > { %296 = vadd.xlane.f32.xlu1 %v295_v36  ;;  %293 = vadd.xlane.f32.xlu0 %v292_v37  ;;  %v307_v48 = vsel %vm253_vm0, %v289_v44, 0.0  ;;  %v304_v49 = vsel %vm253_vm0, %v288_v45, 0.0  ;;  %v313_v52 = vsel %vm253_vm0, %v291_v50, 0.0  ;;  %v310_v53 = vsel %vm253_vm0, %v290_v51, 0.0 }
  0xf5   : > { %302 = vadd.xlane.f32.xlu1 %v301_v42  ;;  %299 = vadd.xlane.f32.xlu0 %v298_v43 }
  0xf9   : > { %308 = vadd.xlane.f32.xlu1 %v307_v48  ;;  %305 = vadd.xlane.f32.xlu0 %v304_v49 }
  0xfd   : > { %314 = vadd.xlane.f32.xlu1 %v313_v52  ;;  %311 = vadd.xlane.f32.xlu0 %v310_v53 }
 0x17e   : > { %v297_v54 = vpop.xlane.xlu1 %296  ;;  %v294_v55 = vpop.xlane.xlu0 %293 }
 0x17f   : > { %v493_v56 = vmul.f32 -1.442695, %v297_v54  ;;  %v492_v57 = vmul.f32 -1.442695, %v294_v55 }
 0x181   : > { %557 = vpow2.f32 %v493_v56 }
 0x182   : > { %559 = vpow2.f32 %v492_v57  ;;  %v303_v58 = vpop.xlane.xlu1 %302  ;;  %v300_v59 = vpop.xlane.xlu0 %299 }
 0x183   : > { %v495_v60 = vmul.f32 -1.442695, %v303_v58  ;;  %v494_v61 = vmul.f32 -1.442695, %v300_v59 }
 0x185   : > { %561 = vpow2.f32 %v495_v60 }
 0x186   : > { %563 = vpow2.f32 %v494_v61  ;;  %v309_v62 = vpop.xlane.xlu1 %308  ;;  %v306_v63 = vpop.xlane.xlu0 %305 }
 0x187   : > { %v497_v3 = vmul.f32 -1.442695, %v309_v62  ;;  %v496_v7 = vmul.f32 -1.442695, %v306_v63 }
 0x189   : > { %565 = vpow2.f32 %v497_v3 }
 0x18a   : > { %567 = vpow2.f32 %v496_v7  ;;  %v315_v10 = vpop.xlane.xlu1 %314  ;;  %v312_v11 = vpop.xlane.xlu0 %311 }
 0x18b   : > { %v558_v16 = vpop.eup %557  ;;  %v499_v17 = vmul.f32 -1.442695, %v315_v10  ;;  %v498_v24 = vmul.f32 -1.442695, %v312_v11 }
 0x18c   : > { %v560_v22 = vpop.eup %559  ;;  %v341_v23 = vadd.f32 1.0, %v558_v16 }
 0x18d   : > { %v340_v25 = vadd.f32 1.0, %v560_v22  ;;  %569 = vpow2.f32 %v499_v17 }
 0x18e   : > { %571 = vrcp.f32 %v341_v23 }
 0x18f   : > { %v562_v26 = vpop.eup %561  ;;  %573 = vrcp.f32 %v340_v25 }
 0x190   : > { %v564_v27 = vpop.eup %563  ;;  %v343_v28 = vadd.f32 1.0, %v562_v26  ;;  %575 = vpow2.f32 %v498_v24 }
 0x191   : > { %v342_v29 = vadd.f32 1.0, %v564_v27 }
 0x192   : > { %577 = vrcp.f32 %v343_v28 }
 0x193   : > { %v566_v30 = vpop.eup %565  ;;  %579 = vrcp.f32 %v342_v29 }
 0x194   : > { %v568_v31 = vpop.eup %567  ;;  %v345_v32 = vadd.f32 1.0, %v566_v30 }
 0x195   : > { %v344_v33 = vadd.f32 1.0, %v568_v31 }
 0x196   : > { %581 = vrcp.f32 %v345_v32 }
 0x197   : > { %v570_v34 = vpop.eup %569  ;;  %583 = vrcp.f32 %v344_v33 }
 0x198   : > { %v572_v35 = vpop.eup %571  ;;  %v347_v36 = vadd.f32 1.0, %v570_v34 }
 0x199   : > { %v574_v37 = vpop.eup %573  ;;  %v366_v38 = vmul.f32 %v572_v35, %v837_v5  ;;  %v367_v39 = vmul.f32 %v572_v35, %v839_v6 }
 0x19a   : > { %v576_v40 = vpop.eup %575  ;;  %v364_v41 = vmul.f32 %v574_v37, %v827_v0  ;;  %v365_v42 = vmul.f32 %v574_v37, %v829_v1  ;;  %585 = vrcp.f32 %v347_v36 }
 0x19b   : > { %382 = vst [vmem:[%s945_s23 + $0x10] sm:$0xff] %v366_v38  ;;  %383 = vst [vmem:[%s945_s23 + $0x18] sm:$0xff] %v367_v39  ;;  %v346_v5 = vadd.f32 1.0, %v576_v40 }
 0x19c   : > { %v578_v6 = vpop.eup %577  ;;  %380 = vst [vmem:[%s945_s23] sm:$0xff] %v364_v41  ;;  %381 = vst [vmem:[%s945_s23 + $0x8] sm:$0xff] %v365_v42 }
 0x19d   : > { %v580_v0 = vpop.eup %579  ;;  %v370_v1 = vmul.f32 %v578_v6, %v843_v8  ;;  %v371_v43 = vmul.f32 %v578_v6, %v845_v9  ;;  %587 = vrcp.f32 %v346_v5 }
 0x19e   : > { %v368_v44 = vmul.f32 %v580_v0, %v831_v2  ;;  %v369_v45 = vmul.f32 %v580_v0, %v835_v4 }
 0x19f   : > { %386 = vst [vmem:[%s945_s23 + $0x30] sm:$0xff] %v370_v1  ;;  %387 = vst [vmem:[%s945_s23 + $0x38] sm:$0xff] %v371_v43 }
 0x1a0   : > { %v582_v46 = vpop.eup %581  ;;  %384 = vst [vmem:[%s945_s23 + $0x20] sm:$0xff] %v368_v44  ;;  %385 = vst [vmem:[%s945_s23 + $0x28] sm:$0xff] %v369_v45 }
 0x1a1   : > { %v584_v47 = vpop.eup %583  ;;  %v374_v8 = vmul.f32 %v582_v46, %v855_v14  ;;  %v375_v9 = vmul.f32 %v582_v46, %v857_v15 }
 0x1a2   : > { %v372_v48 = vmul.f32 %v584_v47, %v851_v12  ;;  %v373_v2 = vmul.f32 %v584_v47, %v853_v13 }
 0x1a3   : > { %390 = vst [vmem:[%s945_s23 + $0x50] sm:$0xff] %v374_v8  ;;  %391 = vst [vmem:[%s945_s23 + $0x58] sm:$0xff] %v375_v9 }
 0x1a4   : > { %v586_v4 = vpop.eup %585  ;;  %388 = vst [vmem:[%s945_s23 + $0x40] sm:$0xff] %v372_v48  ;;  %389 = vst [vmem:[%s945_s23 + $0x48] sm:$0xff] %v373_v2 }
 0x1a5   : > { %v378_v49 = vmul.f32 %v586_v4, %v867_v20  ;;  %v379_v14 = vmul.f32 %v586_v4, %v869_v21 }
 0x1a7   : > { %v588_v15 = vpop.eup %587  ;;  %394 = vst [vmem:[%s945_s23 + $0x70] sm:$0xff] %v378_v49  ;;  %395 = vst [vmem:[%s945_s23 + $0x78] sm:$0xff] %v379_v14 }
 0x1a8   : > { %v376_v12 = vmul.f32 %v588_v15, %v863_v18  ;;  %v377_v13 = vmul.f32 %v588_v15, %v865_v19 }
 0x1aa   : > { %392 = vst [vmem:[%s945_s23 + $0x60] sm:$0xff] %v376_v12  ;;  %393 = vst [vmem:[%s945_s23 + $0x68] sm:$0xff] %v377_v13 }
 0x1ab   : > { %632 = shalt.err (!%p629_p2)
}
 0x1ac   : > { %s633_s26 = scalar_lea.hbm %s976_s8, 2048  ;;  %s637_s29 = scalar_lea.hbm %s1029_s3, 4096 }
 0x1ad   : > { %p634_p4 = scmp.ne.s32.totalorder %s976_s8, %s633_s26  ;;  %p638_p9 = scmp.lt.u32.totalorder %s976_s8, %s1029_s3 }
 0x1ae   : > { %p639_p1 = scmp.lt.u32.totalorder %s637_s29, %s633_s26  ;;  %p641_p6 = scmp.lt.u32.totalorder %s633_s26, %s976_s8 }
 0x1af   : > { %p635_p5 = pnand %p634_p4, %p1036_p11 }
 0x1b0   : > { %p640_p3 = por %p639_p1, %p638_p9 }
 0x1b1   : > { %p636_p7 = pneg %p635_p5 }
 0x1b2   : > { %p642_p12 = por %p641_p6, %p640_p3 }
 0x1b4   : > { %p643_p13 = pnand %p642_p12, %p636_p7 }
 0x1b6   : > { %646 = shalt.err (!%p643_p13)
}
 0x1b7   : > { %s691_s11 = smov 256   ;;  %s692_s23 = smov 16  }
 0x1b8   : > { %509 = dma.vmem_to_hbm [thread:$0]  (%p1036_p11), %s978_s4, 2048, %s976_s8, %s397_s16, %s691_s11, %s691_s11, %s692_s23  }
 0x1b9 PF: > { %s425_s9 = sand.u32 1, %s673_s12   ;;  %p1037_p8 = scmp.ne.s32.totalorder %s1034_s25, 0 }
 0x1ba   : > { %p1038_p10 = scmp.ge.s32.totalorder %s685_s15, 2  ;;  %s426_s6 = scalar_lea.sflag [#allocation4], %s425_s9 }
 0x1bc   : > { %p516_p0 = pnand %p1038_p10, %p1037_p8 }
 0x1be   : > { %668 = dma.done.wait (!%p516_p0), %s426_s6, 2048  }
 0x1bf   : > { %670 = vsyncadd (!%p516_p0), %s426_s6, 4294965248  ;;  %p16_p2 = scmp.ge.s32.totalorder %s738_s18, 4   ;;  %s1039_s12 = smov %s677_s13 }
 0x1c0   : > { %s1040_s13 = smov %s681_s14  ;;  %s1041_s14 = smov %s750_s21 }
 0x1c1   : > { %s1042_s15 = smov %s738_s18  ;;  %18 = sbr.rel (!%p16_p2) target bundleno = 5 (0x5), region = 77 }
 0x1c8   :  { %431 = vsyncpa [#allocation3], 1 }
 0x1c9   :  { %433 = vsyncpa [#allocation3 + $0x1], 1 }
 0x1ca   :  { %434 = vsyncpa [#allocation4], 1 }
 0x1cb   :  { %436 = vsyncpa [#allocation4 + $0x1], 1 }

</bundles_post_ra>
